<compile_context>
chip_gen: v6e
topology: v6e:2x2x1
jax: 0.10.0
libtpu: 0.0.40
codegen_flags: <defaults>
</compile_context>

<pallas_src>
import functools

import jax
import jax.numpy as jnp
from jax.experimental import pallas as pl
from jax.experimental.pallas import tpu as pltpu


# ----------------------------------------------------------------------------
# Generic row-tiled linear (+bias, optional ReLU)
# ----------------------------------------------------------------------------

def _linear_kernel(x_ref, w_ref, b_ref, o_ref, *, relu):
    y = jnp.dot(x_ref[...], w_ref[...], preferred_element_type=jnp.float32)
    y = y + b_ref[...]
    if relu:
        y = jnp.maximum(y, 0.0)
    o_ref[...] = y


def linear(x, w, b, relu=False, tm=256):
    m, k = x.shape
    n = w.shape[1]
    tm = min(tm, m)
    return pl.pallas_call(
        functools.partial(_linear_kernel, relu=relu),
        out_shape=jax.ShapeDtypeStruct((m, n), jnp.float32),
        grid=(pl.cdiv(m, tm),),
        in_specs=[
            pl.BlockSpec((tm, k), lambda i: (i, 0)),
            pl.BlockSpec((k, n), lambda i: (0, 0)),
            pl.BlockSpec((1, n), lambda i: (0, 0)),
        ],
        out_specs=pl.BlockSpec((tm, n), lambda i: (i, 0)),
        compiler_params=pltpu.CompilerParams(dimension_semantics=("parallel",)),
    )(x, w, b.reshape(1, -1))


# ----------------------------------------------------------------------------
# X_ = [X @ W_c] as ONE matmul against the concatenated weight (Din, C*D),
# written out channel-major (C, N, D).
# ----------------------------------------------------------------------------

def _xw_kernel(x_ref, w_ref, o_ref, *, num_channels, d):
    y = jnp.dot(x_ref[...], w_ref[...], preferred_element_type=jnp.float32)
    for c in range(num_channels):
        o_ref[c] = y[:, c * d:(c + 1) * d]


def xw_channels(x, w_cat, *, num_channels, d, tm=256):
    n, din = x.shape
    tm = min(tm, n)
    return pl.pallas_call(
        functools.partial(_xw_kernel, num_channels=num_channels, d=d),
        out_shape=jax.ShapeDtypeStruct((num_channels, n, d), jnp.float32),
        grid=(pl.cdiv(n, tm),),
        in_specs=[
            pl.BlockSpec((tm, din), lambda m: (m, 0)),
            pl.BlockSpec((din, num_channels * d), lambda m: (0, 0)),
        ],
        out_specs=pl.BlockSpec((num_channels, tm, d), lambda m: (0, m, 0)),
        compiler_params=pltpu.CompilerParams(dimension_semantics=("parallel",)),
    )(x, w_cat)


# ----------------------------------------------------------------------------
# GTLayer: fused GTConv (softmax-weighted sum over edge types) + spmm.
# grid = (row_tile, edge_type); the channel loop lives inside the kernel so
# each A[e] row tile is fetched exactly once.  A_comb accumulates in the
# resident output block; the H matmul runs once at the last edge-type step.
# ----------------------------------------------------------------------------

def _gt_layer_kernel(filt_ref, a_ref, h_ref, acomb_ref, hout_ref, *, num_channels):
    e = pl.program_id(1)
    a = a_ref[0]                                   # (tm, N) bf16

    @pl.when(e == 0)
    def _():
        acomb_ref[...] = jnp.zeros_like(acomb_ref)

    for c in range(num_channels):                  # A_comb[c] += filt[c,e] * A[e]
        acomb_ref[c] += filt_ref[c, e] * a

    @pl.when(e == pl.num_programs(1) - 1)
    def _():
        # H_new[c] = (sum_e filt[c,e] * A[e]) @ H[c]  (== sum_e filt*(A@H))
        for c in range(num_channels):
            hout_ref[c] = jnp.dot(
                acomb_ref[c].astype(jnp.bfloat16),
                h_ref[c].astype(jnp.bfloat16),
                preferred_element_type=jnp.float32)


def gt_layer(filt, A, H, *, tm=256):
    """filt (C,E) softmax weights, A (E,N,N) bf16, H (C,N,D) f32.
    Returns (A_comb (C,N,N) f32, H_new (C,N,D) f32)."""
    C, E = filt.shape
    N = A.shape[1]
    D = H.shape[2]
    tm = min(tm, N)
    return pl.pallas_call(
        functools.partial(_gt_layer_kernel, num_channels=C),
        out_shape=(
            jax.ShapeDtypeStruct((C, N, N), jnp.float32),
            jax.ShapeDtypeStruct((C, N, D), jnp.float32),
        ),
        grid=(pl.cdiv(N, tm), E),
        in_specs=[
            pl.BlockSpec(memory_space=pltpu.MemorySpace.SMEM),      # filter (C,E)
            pl.BlockSpec((1, tm, N), lambda m, e: (e, m, 0)),       # A[e] row tile
            pl.BlockSpec((C, N, D), lambda m, e: (0, 0, 0)),        # H (resident)
        ],
        out_specs=(
            pl.BlockSpec((C, tm, N), lambda m, e: (0, m, 0)),       # A_comb tile
            pl.BlockSpec((C, tm, D), lambda m, e: (0, m, 0)),       # H_new tile
        ),
        compiler_params=pltpu.CompilerParams(
            dimension_semantics=("parallel", "arbitrary")),
    )(filt, A, H)


# ----------------------------------------------------------------------------
# GCN propagation:  out = D^{-1/2} (A+I) D^{-1/2} H W + b  without ever
# materializing (A+I) or the normalized adjacency.
# ----------------------------------------------------------------------------

def _gcn_kernel(a_ref, h_ref, w_ref, b_ref, o_ref):
    # TODO(synk): GCNConv is an external module; this assumes symmetric A_comb
    # (true here: every A_e is symmetrized), so row degrees == column degrees.
    a = a_ref[0]                                              # (N, N) f32
    deg = jnp.sum(a, axis=1, keepdims=True) + 1.0             # degrees of A+I
    dinv = jax.lax.rsqrt(deg)                                 # (N, 1)
    hw = jnp.dot(h_ref[0], w_ref[...], preferred_element_type=jnp.float32)
    hw_s = dinv * hw                                          # D^{-1/2} H W
    agg = jnp.dot(a.astype(jnp.bfloat16), hw_s.astype(jnp.bfloat16),
                  preferred_element_type=jnp.float32) + hw_s  # (A+I) @ hw_s
    o_ref[0] = dinv * agg + b_ref[...]


def gcn_layer(a_comb, h, w, b):
    """a_comb (C,N,N), h (C,N,D), w (D,D), b (D,) -> (C,N,D)."""
    # TODO(synk): for large N on v7x (64 MiB VMEM), row-tile this with a
    # precomputed dinv instead of whole-(N,N) residency.
    C, N, _ = a_comb.shape
    D = h.shape[2]
    return pl.pallas_call(
        _gcn_kernel,
        out_shape=jax.ShapeDtypeStruct((C, N, D), jnp.float32),
        grid=(C,),
        in_specs=[
            pl.BlockSpec((1, N, N), lambda c: (c, 0, 0)),
            pl.BlockSpec((1, N, D), lambda c: (c, 0, 0)),
            pl.BlockSpec((D, D), lambda c: (0, 0)),
            pl.BlockSpec((1, D), lambda c: (0, 0)),
        ],
        out_specs=pl.BlockSpec((1, N, D), lambda c: (c, 0, 0)),
        compiler_params=pltpu.CompilerParams(dimension_semantics=("parallel",)),
    )(a_comb, h, w, b.reshape(1, -1))


# ----------------------------------------------------------------------------
# Fused: relu(beta*X_ + (1-beta)*H) -> channel concat (in-register) -> linear1
# ----------------------------------------------------------------------------

def _mix_linear_kernel(x_ref, h_ref, w_ref, b_ref, o_ref, *, beta, num_channels):
    mixed = jnp.concatenate(
        [beta * x_ref[c] + (1.0 - beta) * h_ref[c] for c in range(num_channels)],
        axis=1)                                               # (tm, C*D), concat agg
    mixed = jnp.maximum(mixed, 0.0)
    y = jnp.dot(mixed, w_ref[...], preferred_element_type=jnp.float32) + b_ref[...]
    o_ref[...] = jnp.maximum(y, 0.0)


def mix_linear(x_, h, w1, b1, beta, *, tm=256):
    C, N, D = h.shape
    dout = w1.shape[1]
    tm = min(tm, N)
    return pl.pallas_call(
        functools.partial(_mix_linear_kernel, beta=beta, num_channels=C),
        out_shape=jax.ShapeDtypeStruct((N, dout), jnp.float32),
        grid=(pl.cdiv(N, tm),),
        in_specs=[
            pl.BlockSpec((C, tm, D), lambda m: (0, m, 0)),
            pl.BlockSpec((C, tm, D), lambda m: (0, m, 0)),
            pl.BlockSpec((C * D, dout), lambda m: (0, 0)),
            pl.BlockSpec((1, dout), lambda m: (0, 0)),
        ],
        out_specs=pl.BlockSpec((tm, dout), lambda m: (m, 0)),
        compiler_params=pltpu.CompilerParams(dimension_semantics=("parallel",)),
    )(x_, h, w1, b1.reshape(1, -1))


# ----------------------------------------------------------------------------
# Model glue (pure JAX wiring around the Pallas kernels)
# ----------------------------------------------------------------------------

def gtn_forward(gtn_params, A_bf, X, beta):
    """One GTN block (args.non_local=False, args.channel_agg='concat')."""
    C = gtn_params["gt_weights"][0].shape[0]
    node_dim = gtn_params["linear1_b"].shape[0]
    X_ = xw_channels(X, gtn_params["W_cat"], num_channels=C, d=node_dim)  # (C,N,D)
    H = X_
    a_comb = None
    for gt_w in gtn_params["gt_weights"]:                    # GTLayer loop
        filt = jax.nn.softmax(gt_w, axis=1)                  # GTConv filter
        a_comb, H = gt_layer(filt, A_bf, H)                  # fused conv + spmm
    for gcn in gtn_params["gcns"]:                           # per-channel GCNs
        H = gcn_layer(a_comb, H, gcn["w"], gcn["b"])
    return mix_linear(X_, H, gtn_params["linear1_w"],
                      gtn_params["linear1_b"], beta), a_comb


def gtns_forward(params, A, features, drug_idx, cancer_idx, beta):
    """GTNs.forward, eval path: returns (y_pair, result_A, transformed_features)."""
    # TODO(synk): the original GTLayer also mkdir's a block-matrix save dir;
    # that file-system side effect has no kernel equivalent and is skipped.
    A_bf = A.astype(jnp.bfloat16)                            # bf16 MXU feed for A
    tf = linear(features, params["pre_w"], params["pre_b"], relu=True)
    h = tf
    result_a = None
    for gtn_params in params["gtns"]:
        h, result_a = gtn_forward(gtn_params, A_bf, h, beta)
    pair = jnp.concatenate([h[drug_idx], h[cancer_idx]], axis=1)
    y_pair = linear(pair, params["cls_w"], params["cls_b"], relu=False)
    return y_pair, result_a, tf


def init_params(key, *, num_gtn_layers, num_gt_layers, num_gcn_layers,
                pre_in, w_in, node_dim, num_channels, num_edge_type, num_class):
    keys = iter(jax.random.split(key, 128))

    def glorot(shape):
        fan_in, fan_out = shape[-2], shape[-1]
        lim = (6.0 / (fan_in + fan_out)) ** 0.5
        return jax.random.uniform(next(keys), shape, jnp.float32, -lim, lim)

    params = {
        "pre_w": glorot((pre_in, w_in)),                 # Preprocess Linear
        "pre_b": jnp.zeros((w_in,), jnp.float32),
        "cls_w": glorot((node_dim * 2, num_class)),      # classifier 'NN'
        "cls_b": jnp.zeros((num_class,), jnp.float32),
        "gtns": [],
    }
    in_dim = w_in
    for _ in range(num_gtn_layers):
        ws = glorot((num_channels, in_dim, node_dim))    # per-channel X@W weights
        w_cat = jnp.transpose(ws, (1, 0, 2)).reshape(in_dim, num_channels * node_dim)
        gtn = {
            "W_cat": w_cat,
            # GTConv.reset_parameters: constant 1 / num_edges
            "gt_weights": [jnp.full((num_channels, num_edge_type),
                                    1.0 / num_edge_type, jnp.float32)
                           for _ in range(num_gt_layers)],
            "gcns": [{"w": glorot((node_dim, node_dim)),
                      "b": jnp.zeros((node_dim,), jnp.float32)}
                     for _ in range(num_gcn_layers)],
            "linear1_w": glorot((node_dim * num_channels, node_dim)),
            "linear1_b": jnp.zeros((node_dim,), jnp.float32),
        }
        params["gtns"].append(gtn)
        in_dim = node_dim
    return params


# ----------------------------------------------------------------------------
if __name__ == "__main__":
    N = 64              # num_nodes
    E = 3               # num_edge_type
    C = 2               # args.num_channels
    PRE_IN = 16         # preprocess input dim
    W_IN = 32           # preprocess output dim == w_in
    NODE_DIM = 32       # args.node_dim
    NUM_GT_LAYERS = 2   # args.num_layers
    NUM_GCN_LAYERS = 1  # args.num_GCN_layers
    NUM_GTN_LAYERS = 1  # args.num_GTN_layers
    NUM_CLASS = 4
    P = 8               # number of drug/cancer pairs
    BETA = 0.5

    key = jax.random.PRNGKey(0)
    k_a, k_m, k_f, k_d, k_c, k_p = jax.random.split(key, 6)

    # sparse-ish symmetric non-negative adjacency per edge type (dense storage)
    raw = jax.random.uniform(k_a, (E, N, N), jnp.float32)
    mask = (jax.random.uniform(k_m, (E, N, N)) < 0.2).astype(jnp.float32)
    A = raw * mask
    A = 0.5 * (A + jnp.transpose(A, (0, 2, 1)))

    features = jax.random.normal(k_f, (N, PRE_IN), jnp.float32)
    drug_idx = jax.random.randint(k_d, (P,), 0, N)
    cancer_idx = jax.random.randint(k_c, (P,), 0, N)

    params = init_params(
        k_p,
        num_gtn_layers=NUM_GTN_LAYERS, num_gt_layers=NUM_GT_LAYERS,
        num_gcn_layers=NUM_GCN_LAYERS, pre_in=PRE_IN, w_in=W_IN,
        node_dim=NODE_DIM, num_channels=C, num_edge_type=E,
        num_class=NUM_CLASS)

    y_pair, result_A, transformed = gtns_forward(
        params, A, features, drug_idx, cancer_idx, BETA)
    jax.block_until_ready((y_pair, result_A, transformed))

    assert y_pair.shape == (P, NUM_CLASS)
    assert result_A.shape == (C, N, N)
    assert transformed.shape == (N, W_IN)
    print("KERNEL_OK")
</pallas_src>

<mosaic_0001>
module attributes {stable_mosaic.version = 11 : i64} {
  func.func @_linear_kernel(%arg0: i32, %arg1: memref<64x16xf32, #tpu.memory_space<vmem>>, %arg2: memref<16x32xf32, #tpu.memory_space<vmem>>, %arg3: memref<1x32xf32, #tpu.memory_space<vmem>>, %arg4: memref<64x32xf32, #tpu.memory_space<vmem>>) attributes {dimension_semantics = [#tpu.dimension_semantics<parallel>], iteration_bounds = array<i64: 1>, scalar_prefetch = 0 : i64, scratch_operands = 0 : i64, tpu.core_type = #tpu.core_type<tc>, window_params = [{transform_indices = @transform_0, window_bounds = array<i64: 64, 16>}, {pipeline_mode = #tpu.pipeline_mode<synchronous>, transform_indices = @transform_1, window_bounds = array<i64: 16, 32>}, {pipeline_mode = #tpu.pipeline_mode<synchronous>, transform_indices = @transform_2, window_bounds = array<i64: 1, 32>}, {transform_indices = @transform_3, window_bounds = array<i64: 64, 32>}]} {
    %c0 = arith.constant 0 : index
    %c0_0 = arith.constant 0 : index
    %0 = vector.load %arg1[%c0, %c0_0] : memref<64x16xf32, #tpu.memory_space<vmem>>, vector<64x16xf32>
    %c0_1 = arith.constant 0 : index
    %c0_2 = arith.constant 0 : index
    %1 = vector.load %arg2[%c0_1, %c0_2] : memref<16x32xf32, #tpu.memory_space<vmem>>, vector<16x32xf32>
    %cst = arith.constant dense<0.000000e+00> : vector<64x32xf32>
    %2 = tpu.matmul %0, %1, %cst {dimension_numbers = #tpu.dot_dimension_numbers<[1], [0], [0], [1], [0, 0, 1, 1], [], []>} : vector<64x16xf32>, vector<16x32xf32>, vector<64x32xf32> -> vector<64x32xf32>
    %c0_3 = arith.constant 0 : index
    %c0_4 = arith.constant 0 : index
    %3 = vector.load %arg3[%c0_3, %c0_4] : memref<1x32xf32, #tpu.memory_space<vmem>>, vector<1x32xf32>
    %4 = vector.broadcast %3 : vector<1x32xf32> to vector<64x32xf32>
    %5 = arith.addf %2, %4 : vector<64x32xf32>
    %cst_5 = arith.constant 0.000000e+00 : f32
    %6 = vector.broadcast %cst_5 : f32 to vector<64x32xf32>
    %7 = arith.maximumf %5, %6 : vector<64x32xf32>
    %c0_6 = arith.constant 0 : index
    %c0_7 = arith.constant 0 : index
    %8 = vector.load %arg4[%c0_6, %c0_7] : memref<64x32xf32, #tpu.memory_space<vmem>>, vector<64x32xf32>
    tpu.vector_store %arg4[%c0_6, %c0_7], %7 {strides = array<i32>} : memref<64x32xf32, #tpu.memory_space<vmem>>, vector<64x32xf32>,
    return
  }
  func.func @transform_0(%arg0: i32) -> (i32, i32) {
    %c0_i32 = arith.constant 0 : i32
    %c0_i32_0 = arith.constant 0 : i32
    return %arg0, %c0_i32 : i32, i32
  }
  func.func @transform_1(%arg0: i32) -> (i32, i32) {
    %c0_i32 = arith.constant 0 : i32
    %c0_i32_0 = arith.constant 0 : i32
    %c0_i32_1 = arith.constant 0 : i32
    return %c0_i32, %c0_i32_0 : i32, i32
  }
  func.func @transform_2(%arg0: i32) -> (i32, i32) {
    %c0_i32 = arith.constant 0 : i32
    %c0_i32_0 = arith.constant 0 : i32
    %c0_i32_1 = arith.constant 0 : i32
    return %c0_i32, %c0_i32_0 : i32, i32
  }
  func.func @transform_3(%arg0: i32) -> (i32, i32) {
    %c0_i32 = arith.constant 0 : i32
    %c0_i32_0 = arith.constant 0 : i32
    return %arg0, %c0_i32 : i32, i32
  }
}

</mosaic_0001>

<bundles_post_ra>
// kernel: tpu_custom_call.1
= control target key start
LH: loop header
LB: loop body
LE: loop exit
PB: predicated region body
PF: predicated region fallthrough
CT: control target
= control target key end

     0   :  { %vm31_vm0 = vcmask 130048   ;;  %vm169_vm1 = vcmask 261120   ;;  %s314_s1 = inlined_call_operand.vmem [shape: f32[16,32], index: 1, kind: input, shape index: {}]   ;;  %s315_s0 = inlined_call_operand.vmem [shape: f32[64,16], index: 0, kind: input, shape index: {}]   ;;  %s316_s2 = inlined_call_operand.vmem [shape: f32[1,32], index: 2, kind: input, shape index: {}]   ;;  %s317_s3 = inlined_call_operand.vmem [shape: f32[64,32], index: 3, kind: output, shape index: {}]  }
   0x1   :  { %v23_v0 = vld [vmem:[%s314_s1 + $0x8] sm:$0xff]  ;;  %v22_v1 = vld [vmem:[%s314_s1] sm:$0xff]  ;;  %v16_v6 = vld [vmem:[%s315_s0 + $0x10] sm:$0xff] }
   0x2   :  { %201 = vmatprep.subr.mxu0 %v23_v0  ;;  %217 = vmatprep.subr.mxu1 %v23_v0  ;;  %v14_v2 = vld [vmem:[%s315_s0] sm:$0xff]  ;;  %v15_v4 = vld [vmem:[%s315_s0 + $0x8] sm:$0xff]  ;;  %v20_v7 = vld [vmem:[%s315_s0 + $0x30] sm:$0xff] }
   0x3   :  { %202 = vmatpush3.msra.mxu0 %v23_v0  ;;  %219 = vmatpush3.msra.mxu1 %v23_v0  ;;  %v18_v3 = vld [vmem:[%s315_s0 + $0x20] sm:$0xff]  ;;  %v19_v5 = vld [vmem:[%s315_s0 + $0x28] sm:$0xff]  ;;  %v17_v8 = vld [vmem:[%s315_s0 + $0x18] sm:$0xff] }
   0x4   :  { %203 = vmatprep.subr.mxu0 %v22_v1  ;;  %218 = vmatprep.subr.mxu1 %v22_v1  ;;  %v21_v9 = vld [vmem:[%s315_s0 + $0x38] sm:$0xff]  ;;  %v182_v10 = vld [vmem:[%s316_s2] ss:$0 sm:$0xff] }
   0x5   :  { %204 = vmatpush3.msra.mxu0 %v22_v1  ;;  %220 = vmatpush3.msra.mxu1 %v22_v1 }
   0x6   :  { %205 = vmatprep.mubr.msk.f32.mxu0 %vm31_vm0, %v14_v2  ;;  %211 = vmatprep.mubr.msk.f32.mxu1 %vm31_vm0, %v18_v3 }
   0x7   :  { %206 = vmatmul.mubr.msk.f32.vlgmr.msra.gmra.mxu0 %vm31_vm0, %v15_v4  ;;  %212 = vmatmul.mubr.msk.f32.vlgmr.msra.gmra.mxu1 %vm31_vm0, %v19_v5 }
   0x8   :  { %208 = vmatprep.mubr.msk.f32.mxu0 %vm31_vm0, %v16_v6  ;;  %214 = vmatprep.mubr.msk.f32.mxu1 %vm31_vm0, %v20_v7 }
   0xb   :  { %209 = vmatmul.mubr.msk.f32.gmra.mxu0 %vm31_vm0, %v17_v8  ;;  %215 = vmatmul.mubr.msk.f32.gmra.mxu1 %vm31_vm0, %v21_v9 }
  0xc7   :  { %v207_v11 = vpop.f32.mrf.mxu0  ;;  %v213_v12 = vpop.f32.mrf.mxu1 }
  0xc8   :  { %v128_v13 = vadd.f32 %v207_v11, %v182_v10  ;;  %v148_v14 = vadd.f32 %v213_v12, %v182_v10 }
  0xc9   :  { %v122_v15 = vpop.f32.mrf.mxu0  ;;  %v142_v16 = vpop.f32.mrf.mxu1 }
  0xca   :  { %v162_v17 = vmax.f32 %v128_v13, 0.0  ;;  %v166_v18 = vmax.f32 %v148_v14, 0.0  ;;  %v123_v19 = vadd.f32 %v182_v10, %v122_v15  ;;  %v143_v20 = vadd.f32 %v182_v10, %v142_v16 }
  0xcb   :  { %v210_v21 = vpop.f32.mrf.mxu0  ;;  %v216_v22 = vpop.f32.mrf.mxu1 }
  0xcc   :  { %171 = vst.msk [vmem:[%s317_s3 + $0x8] sm:$0xff] %vm169_vm1, %v162_v17  ;;  %175 = vst.msk [vmem:[%s317_s3 + $0x28] sm:$0xff] %vm169_vm1, %v166_v18  ;;  %v161_v23 = vmax.f32 %v123_v19, 0.0  ;;  %v165_v24 = vmax.f32 %v143_v20, 0.0  ;;  %v138_v25 = vadd.f32 %v210_v21, %v182_v10  ;;  %v158_v26 = vadd.f32 %v216_v22, %v182_v10 }
  0xcd   :  { %v132_v27 = vpop.f32.mrf.mxu0  ;;  %v152_v28 = vpop.f32.mrf.mxu1 }
  0xce   :  { %170 = vst.msk [vmem:[%s317_s3] sm:$0xff] %vm169_vm1, %v161_v23  ;;  %174 = vst.msk [vmem:[%s317_s3 + $0x20] sm:$0xff] %vm169_vm1, %v165_v24  ;;  %v164_v29 = vmax.f32 %v138_v25, 0.0  ;;  %v168_v30 = vmax.f32 %v158_v26, 0.0  ;;  %v133_v31 = vadd.f32 %v182_v10, %v132_v27  ;;  %v153_v32 = vadd.f32 %v182_v10, %v152_v28 }
  0xd0   :  { %173 = vst.msk [vmem:[%s317_s3 + $0x18] sm:$0xff] %vm169_vm1, %v164_v29  ;;  %177 = vst.msk [vmem:[%s317_s3 + $0x38] sm:$0xff] %vm169_vm1, %v168_v30  ;;  %v163_v33 = vmax.f32 %v133_v31, 0.0  ;;  %v167_v34 = vmax.f32 %v153_v32, 0.0 }
  0xd2   :  { %172 = vst.msk [vmem:[%s317_s3 + $0x10] sm:$0xff] %vm169_vm1, %v163_v33  ;;  %176 = vst.msk [vmem:[%s317_s3 + $0x30] sm:$0xff] %vm169_vm1, %v167_v34 }

</bundles_post_ra>
